<compile_context>
chip_gen: v5e
topology: v5e:2x2
jax: 0.10.0
libtpu: 0.0.40
codegen_flags: <defaults>
</compile_context>

<pallas_src>
import jax
import jax.numpy as jnp
from jax.experimental import pallas as pl
from jax.experimental.pallas import tpu as pltpu


def _edge_model_input_kernel(img_ref, edg_ref, msk_ref, out_ref):
    """Fused masking + channel concat for one tile.

    img_ref, edg_ref, msk_ref : (bn, thw)     VMEM
    out_ref                   : (bn, 3, thw)  VMEM  (NCHW channel axis in the middle)
    """
    m = msk_ref[...]
    inv = 1.0 - m
    # All three channel writes land in the same output block, so the writeback to
    # HBM is a single contiguous DMA per grid step.
    out_ref[:, 0, :] = img_ref[...] * inv + m   # images_masked = images*(1-masks) + masks
    out_ref[:, 1, :] = edg_ref[...] * inv       # edges_masked  = edges *(1-masks)
    out_ref[:, 2, :] = m                        # masks (pass-through into the concat)


def _pick_tiles(n, hw, itemsize, vmem_budget_bytes=12 * 1024 * 1024):
    """Choose (bn, thw) tile sizes that respect TPU (8,128) tiling and the VMEM budget."""
    # Input block second-to-last dim must be a multiple of 8 or equal the full dim.
    # NOTE: for bf16 inputs the sublane quantum becomes 16; f32 is assumed here.
    bn = 8 if (n % 8 == 0) else n
    # Per grid step, double-buffered: 3 input planes + one 3-channel output block
    #   => 2 * (3 + 3) * bn * thw * itemsize bytes.
    max_thw = max(vmem_budget_bytes // (12 * bn * itemsize), 128)
    if hw <= max_thw:
        return bn, hw
    t = (max_thw // 128) * 128
    while t >= 128:
        if hw % t == 0:
            return bn, t
        t -= 128
    return bn, hw  # fallback: whole spatial row per step (vmem limit raised below)


def edge_model_forward(images, edges, masks):
    """Pallas implementation of EdgeModel.forward input preparation.

    images, edges, masks: (N, 1, H, W) float32 NCHW (grayscale, as in EdgeConnect).
    Returns the generator input tensor of shape (N, 3, H, W).
    """
    N, C, H, W = images.shape
    assert C == 1 and edges.shape == images.shape and masks.shape == images.shape
    hw = H * W
    dtype = images.dtype
    itemsize = jnp.dtype(dtype).itemsize

    img2 = images.reshape(N, hw)
    edg2 = edges.reshape(N, hw)
    msk2 = masks.reshape(N, hw)

    bn, thw = _pick_tiles(N, hw, itemsize)
    assert N % bn == 0 and hw % thw == 0
    grid = (N // bn, hw // thw)

    # Double-buffered in+out blocks per step, plus headroom; stays well under the
    # 64 MiB physical VMEM of v7x while comfortably above the per-step requirement.
    per_step_bytes = 2 * 6 * bn * thw * itemsize
    vmem_limit = int(max(32 * 1024 * 1024, 2 * per_step_bytes))

    in_spec = pl.BlockSpec((bn, thw), lambda i, j: (i, j))
    out_spec = pl.BlockSpec((bn, 3, thw), lambda i, j: (i, 0, j))

    out = pl.pallas_call(
        _edge_model_input_kernel,
        out_shape=jax.ShapeDtypeStruct((N, 3, hw), dtype),
        grid=grid,
        in_specs=[in_spec, in_spec, in_spec],
        out_specs=out_spec,
        compiler_params=pltpu.CompilerParams(
            dimension_semantics=("parallel", "parallel"),
            vmem_limit_bytes=vmem_limit,
        ),
    )(img2, edg2, msk2)

    # (N, 3, H*W) -> (N, 3, H, W): contiguous reshape, no data movement.
    inputs = out.reshape(N, 3, H, W)

    # TODO(synk): `outputs = self.generator(inputs)` — EdgeGenerator (and the
    # training-only Discriminator / losses / Adam steps in process()/backward())
    # are not defined in the provided source, so only the fused masked-concat
    # generator input is produced here. Longer term this prep should be fused
    # into the generator's first conv to avoid one HBM round trip.
    return inputs


def _reference_forward(images, edges, masks):
    """Pure-JAX reference mirroring the torch forward semantics exactly."""
    edges_masked = edges * (1.0 - masks)
    images_masked = images * (1.0 - masks) + masks
    return jnp.concatenate((images_masked, edges_masked, masks), axis=1)


if __name__ == "__main__":
    key = jax.random.PRNGKey(0)

    # Small canonical test shape.
    k_img, k_edg, k_msk, key = jax.random.split(key, 4)
    N, C, H, W = 2, 1, 16, 16
    images = jax.random.uniform(k_img, (N, C, H, W), dtype=jnp.float32)
    edges = (jax.random.uniform(k_edg, (N, C, H, W)) > 0.5).astype(jnp.float32)
    masks = (jax.random.uniform(k_msk, (N, C, H, W)) > 0.5).astype(jnp.float32)

    out = jax.block_until_ready(edge_model_forward(images, edges, masks))
    ref = _reference_forward(images, edges, masks)
    assert out.shape == (N, 3, H, W), out.shape
    assert jnp.allclose(out, ref, atol=1e-6), "mismatch vs pure-JAX reference (small)"

    # Second case exercising a multi-step grid (batch tiling with bn=8).
    k_img, k_edg, k_msk, key = jax.random.split(key, 4)
    N2, H2, W2 = 16, 64, 64
    images2 = jax.random.uniform(k_img, (N2, 1, H2, W2), dtype=jnp.float32)
    edges2 = (jax.random.uniform(k_edg, (N2, 1, H2, W2)) > 0.5).astype(jnp.float32)
    masks2 = (jax.random.uniform(k_msk, (N2, 1, H2, W2)) > 0.5).astype(jnp.float32)

    out2 = jax.block_until_ready(edge_model_forward(images2, edges2, masks2))
    ref2 = _reference_forward(images2, edges2, masks2)
    assert out2.shape == (N2, 3, H2, W2), out2.shape
    assert jnp.allclose(out2, ref2, atol=1e-6), "mismatch vs pure-JAX reference (grid)"

    print("KERNEL_OK")
</pallas_src>

<mosaic_0001>
module attributes {stable_mosaic.version = 11 : i64} {
  func.func @_edge_model_input_kernel(%arg0: i32, %arg1: i32, %arg2: memref<2x256xf32, #tpu.memory_space<vmem>>, %arg3: memref<2x256xf32, #tpu.memory_space<vmem>>, %arg4: memref<2x256xf32, #tpu.memory_space<vmem>>, %arg5: memref<2x3x256xf32, #tpu.memory_space<vmem>>) attributes {dimension_semantics = [#tpu.dimension_semantics<parallel>, #tpu.dimension_semantics<parallel>], iteration_bounds = array<i64: 1, 1>, scalar_prefetch = 0 : i64, scratch_operands = 0 : i64, tpu.core_type = #tpu.core_type<tc>, window_params = [{transform_indices = @transform_0, window_bounds = array<i64: 2, 256>}, {transform_indices = @transform_1, window_bounds = array<i64: 2, 256>}, {transform_indices = @transform_2, window_bounds = array<i64: 2, 256>}, {transform_indices = @transform_3, window_bounds = array<i64: 2, 3, 256>}]} {
    %c0 = arith.constant 0 : index
    %c0_0 = arith.constant 0 : index
    %0 = vector.load %arg4[%c0, %c0_0] : memref<2x256xf32, #tpu.memory_space<vmem>>, vector<2x256xf32>
    %cst = arith.constant 1.000000e+00 : f32
    %1 = vector.broadcast %cst : f32 to vector<2x256xf32>
    %2 = arith.subf %1, %0 : vector<2x256xf32>
    %c0_1 = arith.constant 0 : index
    %c0_2 = arith.constant 0 : index
    %3 = vector.load %arg2[%c0_1, %c0_2] : memref<2x256xf32, #tpu.memory_space<vmem>>, vector<2x256xf32>
    %4 = arith.mulf %3, %2 : vector<2x256xf32>
    %5 = arith.addf %4, %0 : vector<2x256xf32>
    %c0_3 = arith.constant 0 : index
    %c0_4 = arith.constant 0 : index
    %c0_5 = arith.constant 0 : index
    %6 = vector.load %arg5[%c0_3, %c0_4, %c0_5] : memref<2x3x256xf32, #tpu.memory_space<vmem>>, vector<2x1x256xf32>
    %7 = vector.shape_cast %6 : vector<2x1x256xf32> to vector<2x256xf32>
    %8 = vector.shape_cast %5 : vector<2x256xf32> to vector<2x1x256xf32>
    tpu.vector_store %arg5[%c0_3, %c0_4, %c0_5], %8 {strides = array<i32>} : memref<2x3x256xf32, #tpu.memory_space<vmem>>, vector<2x1x256xf32>,
    %c0_6 = arith.constant 0 : index
    %c0_7 = arith.constant 0 : index
    %9 = vector.load %arg3[%c0_6, %c0_7] : memref<2x256xf32, #tpu.memory_space<vmem>>, vector<2x256xf32>
    %10 = arith.mulf %9, %2 : vector<2x256xf32>
    %c0_8 = arith.constant 0 : index
    %c1 = arith.constant 1 : index
    %c0_9 = arith.constant 0 : index
    %11 = vector.load %arg5[%c0_8, %c1, %c0_9] : memref<2x3x256xf32, #tpu.memory_space<vmem>>, vector<2x1x256xf32>
    %12 = vector.shape_cast %11 : vector<2x1x256xf32> to vector<2x256xf32>
    %13 = vector.shape_cast %10 : vector<2x256xf32> to vector<2x1x256xf32>
    tpu.vector_store %arg5[%c0_8, %c1, %c0_9], %13 {strides = array<i32>} : memref<2x3x256xf32, #tpu.memory_space<vmem>>, vector<2x1x256xf32>,
    %c0_10 = arith.constant 0 : index
    %c2 = arith.constant 2 : index
    %c0_11 = arith.constant 0 : index
    %14 = vector.load %arg5[%c0_10, %c2, %c0_11] : memref<2x3x256xf32, #tpu.memory_space<vmem>>, vector<2x1x256xf32>
    %15 = vector.shape_cast %14 : vector<2x1x256xf32> to vector<2x256xf32>
    %16 = vector.shape_cast %0 : vector<2x256xf32> to vector<2x1x256xf32>
    tpu.vector_store %arg5[%c0_10, %c2, %c0_11], %16 {strides = array<i32>} : memref<2x3x256xf32, #tpu.memory_space<vmem>>, vector<2x1x256xf32>,
    return
  }
  func.func @transform_0(%arg0: i32, %arg1: i32) -> (i32, i32) {
    %c0_i32 = arith.constant 0 : i32
    return %arg0, %arg1 : i32, i32
  }
  func.func @transform_1(%arg0: i32, %arg1: i32) -> (i32, i32) {
    %c0_i32 = arith.constant 0 : i32
    return %arg0, %arg1 : i32, i32
  }
  func.func @transform_2(%arg0: i32, %arg1: i32) -> (i32, i32) {
    %c0_i32 = arith.constant 0 : i32
    return %arg0, %arg1 : i32, i32
  }
  func.func @transform_3(%arg0: i32, %arg1: i32) -> (i32, i32, i32) {
    %c0_i32 = arith.constant 0 : i32
    %c0_i32_0 = arith.constant 0 : i32
    return %arg0, %c0_i32, %arg1 : i32, i32, i32
  }
}

</mosaic_0001>

<bundles_post_ra>
// kernel: tpu_custom_call.1
= control target key start
LH: loop header
LB: loop body
LE: loop exit
PB: predicated region body
PF: predicated region fallthrough
CT: control target
= control target key end

     0   :  { %8 = vsyncpa [#allocation3], 0  ;;  %s296_s0 = inlined_call_operand.hbm [shape: f32[2,256], index: 0, kind: input, shape index: {}]   ;;  %s297_s1 = inlined_call_operand.hbm [shape: f32[2,256], index: 1, kind: input, shape index: {}]   ;;  %s298_s2 = inlined_call_operand.hbm [shape: f32[2,256], index: 2, kind: input, shape index: {}]   ;;  %s299_s3 = inlined_call_operand.vmem [shape: f32[2,3,256], index: 3, kind: output, shape index: {}]  }
   0x1   :  { %9 = vsyncpa [#allocation5], 0  ;;  %s26_s14 = sshll.u32 %s297_s1, 4  ;;  %s212_s15 = smov [#allocation4]   ;;  %s27_s14 = int_to_ptr.hbm [resolvable:$true] %s26_s14 }
   0x2   :  { %s28_s16 = sshll.u32 %s212_s15, 4  ;;  %s15_s19 = sshll.u32 %s296_s0, 4  ;;  %s29_s16 = int_to_ptr.vmem [resolvable:$true] %s28_s16  ;;  %s16_s19 = int_to_ptr.hbm [resolvable:$true] %s15_s19 }
   0x3   :  { %31 = dma.hbm_to_vmem [thread:$0]  %s27_s14, 64, %s29_s16, [#allocation5]  }
   0x4   :  { %s213_s20 = smov [#allocation2]   ;;  %s37_s24 = sshll.u32 %s298_s2, 4  ;;  %s38_s24 = int_to_ptr.hbm [resolvable:$true] %s37_s24 }
   0x5   :  { %s17_s21 = sshll.u32 %s213_s20, 4  ;;  %s214_s1 = smov [#allocation6]   ;;  %s18_s21 = int_to_ptr.vmem [resolvable:$true] %s17_s21 }
   0x6   :  { %20 = dma.hbm_to_vmem [thread:$0]  %s16_s19, 64, %s18_s21, [#allocation3]  }
   0x7   :  { %s39_s25 = sshll.u32 %s214_s1, 4  ;;  %s40_s25 = int_to_ptr.vmem [resolvable:$true] %s39_s25 }
   0x8   :  { %42 = dma.hbm_to_vmem [thread:$0]  %s38_s24, 64, %s40_s25, [#allocation5]  }
   0x9   :  { %208 = dma.done.wait [#allocation3], 64  }
   0xa   :  { %209 = vsyncadd [#allocation3], 4294967232 }
   0xb   :  { %210 = dma.done.wait [#allocation5], 128  }
   0xc   :  { %211 = vsyncadd [#allocation5], 4294967168  ;;  %vm64_vm0 = vcmask 1040384   ;;  %v79_v0 = vlaneseq  ;;  %vm66_vm1 = vcmask 1042434   ;;  %vm68_vm2 = vcmask 1041408  }
   0xd   :  { %vm70_vm3 = vcmask 1041409   ;;  %vm72_vm4 = vcmask 1043459   ;;  %v55_v1 = vld [vmem:[#allocation6] sm:$0xf]  ;;  %v57_v2 = vld [vmem:[#allocation2] sm:$0xf] }
   0xe   :  { %v86_v3 = vld [vmem:[#allocation4] sm:$0xf]  ;;  %v56_v4 = vsub.f32 1.0, %v55_v1  ;;  %v106_v5 = vrot.slane %v55_v1, 1  ;;  %v107_v6 = vrot.slane %v55_v1, 2  ;;  %v108_v7 = vrot.slane %v55_v1, 3 }
   0xf   :  { %vm244_vm5 = vcmp.lt.s32.totalorder %v79_v0, 256  ;;  %vm74_vm6 = vcmask 1042433  }
  0x10   :  { %v58_v9 = vmul.f32 %v57_v2, %v56_v4  ;;  %v87_v10 = vmul.f32 %v86_v3, %v56_v4  ;;  %v109_v11 = vsel %vm64_vm0, %v55_v1, %v106_v5  ;;  %v110_v12 = vsel %vm66_vm1, %v107_v6, %v108_v7 }
  0x11   :  { %v111_v13 = vsel %vm68_vm2, %v109_v11, %v110_v12  ;;  %v112_v14 = vsel %vm70_vm3, %v55_v1, %v106_v5  ;;  %v113_v15 = vsel %vm72_vm4, %v107_v6, %v108_v7 }
  0x12   :  { %v59_v16 = vadd.f32 %v58_v9, %v55_v1  ;;  %v89_v17 = vrot.slane %v87_v10, 1  ;;  %v90_v18 = vrot.slane %v87_v10, 2  ;;  %v91_v19 = vrot.slane %v87_v10, 3  ;;  %131 = vst.msk [vmem:[%s299_s3 + $0x2] ss:$4 sm:$0x3] %vm244_vm5, %v111_v13 }
  0x13   :  { %v114_v20 = vsel %vm74_vm6, %v112_v14, %v113_v15 }
  0x14   :  { %v61_v21 = vrot.slane %v59_v16, 1  ;;  %v62_v22 = vrot.slane %v59_v16, 2  ;;  %v63_v23 = vrot.slane %v59_v16, 3  ;;  %v92_v24 = vsel %vm64_vm0, %v87_v10, %v89_v17 }
  0x15   :  { %v93_v25 = vsel %vm66_vm1, %v90_v18, %v91_v19  ;;  %v95_v26 = vsel %vm70_vm3, %v87_v10, %v89_v17  ;;  %v96_v27 = vsel %vm72_vm4, %v90_v18, %v91_v19  ;;  %v115_v28 = vrot.slane %v114_v20, 1 }
  0x16   :  { %v65_v29 = vsel %vm64_vm0, %v59_v16, %v61_v21  ;;  %v67_v30 = vsel %vm66_vm1, %v62_v22, %v63_v23  ;;  %v71_v31 = vsel %vm70_vm3, %v59_v16, %v61_v21  ;;  %v73_v32 = vsel %vm72_vm4, %v62_v22, %v63_v23 }
  0x17   :  { %v69_v33 = vsel %vm68_vm2, %v65_v29, %v67_v30  ;;  %v75_v34 = vsel %vm74_vm6, %v71_v31, %v73_v32  ;;  %v94_v35 = vsel %vm68_vm2, %v92_v24, %v93_v25  ;;  %v97_v36 = vsel %vm74_vm6, %v95_v26, %v96_v27  ;;  %132 = vst.msk [vmem:[%s299_s3 + $0xa] ss:$4 sm:$0x3] %vm244_vm5, %v115_v28 }
  0x18   :  { %83 = vst.msk [vmem:[%s299_s3] ss:$4 sm:$0x3] %vm244_vm5, %v69_v33  ;;  %v76_v37 = vrot.slane %v75_v34, 1  ;;  %v98_v38 = vrot.slane %v97_v36, 1 }
  0x19   :  { %129 = vst.msk [vmem:[%s299_s3 + $0x1] ss:$4 sm:$0x3] %vm244_vm5, %v94_v35 }
  0x1a   :  { %128 = vst.msk [vmem:[%s299_s3 + $0x8] ss:$4 sm:$0x3] %vm244_vm5, %v76_v37 }
  0x1b   :  { %130 = vst.msk [vmem:[%s299_s3 + $0x9] ss:$4 sm:$0x3] %vm244_vm5, %v98_v38 }
  0x1c   :  { %126 = vsyncpa [#allocation3], 1 }
  0x1d   :  { %127 = vsyncpa [#allocation5], 1 }

</bundles_post_ra>
